<compile_context>
chip_gen: v7x
topology: tpu7x:2x2x1
jax: 0.10.0
libtpu: 0.0.40
codegen_flags: <defaults>
</compile_context>

<pallas_src>
import functools

import jax
import jax.numpy as jnp
from jax.experimental import pallas as pl
from jax.experimental.pallas import tpu as pltpu

F_HIDDEN = 32   # backbone feature width


# ----------------------------------------------------------------------------
# trace-time hardware-aware tiling helpers
# ----------------------------------------------------------------------------
def _round_up(x, m):
    return ((x + m - 1) // m) * m


def _vmem_capacity_bytes():
    try:
        info = pltpu.get_tpu_info()
        cap = getattr(info, "vmem_capacity_bytes", None)
        if cap:
            return int(cap)
    except Exception:
        pass
    return 64 * 1024 * 1024          # conservative (v7x-sized) fallback


def _pick_tile_hw(hw, c, f, vmem_cap, max_tile=32768):
    """Largest multiple-of-128 HW tile that fits the per-step VMEM budget."""
    hw128 = _round_up(hw, 128)
    # per-lane f32 bytes: double-buffered x / gt / hm blocks + (F, tile) feat interm.
    per_lane = 4 * (2 * c + 2 + 2 + f)
    budget = max(vmem_cap // 4, 128 * per_lane)     # headroom for compiler scratch
    t = min(max_tile, budget // per_lane, hw128)
    return max(128, (t // 128) * 128)


# ----------------------------------------------------------------------------
# Kernel 1 (fused): backbone 1x1-conv + ReLU + sigmoid heatmap head (MXU)
#                   + heatmap-MSE per-lane partial accumulation
# Layout: x is (B, C, HW) (free reshape of NCHW), tiled along HW (lane axis).
# Grid: (B, split, tiles_per_split); loss block resident across the last axis.
# ----------------------------------------------------------------------------
def _backbone_mse_kernel(x_ref, gt_ref, wt_ref, b_ref, wh_ref, bh_ref,
                         hm_ref, loss_ref, *, tiles_per_split, hw_valid, need_mask):
    s = pl.program_id(1)
    t = pl.program_id(2)

    # per-(batch, core-split) squared-error lane accumulator
    @pl.when(t == 0)
    def _():
        loss_ref[...] = jnp.zeros_like(loss_ref)

    x = x_ref[0]                                                      # (C, TILE)
    feat = jnp.dot(wt_ref[...], x,
                   preferred_element_type=jnp.float32) + b_ref[...]  # (F, TILE)
    feat = jnp.maximum(feat, 0.0)                                     # ReLU

    # heatmap head on the MXU: (1,F)@(F,TILE) -> lane-dense (1,TILE)
    logits = jnp.dot(wh_ref[...], feat,
                     preferred_element_type=jnp.float32) + bh_ref[...]
    hm = jax.nn.sigmoid(logits)                                       # (1, TILE)
    hm_ref[0] = hm                                                    # unmasked vst

    # fused detection-loss contribution (MSE stand-in for CenterNet focal loss)
    d = hm - gt_ref[0]
    d2 = d * d                                                        # (1, TILE)
    tile = d2.shape[-1]
    if need_mask:
        base = (s * tiles_per_split + t) * tile
        lane = jax.lax.broadcasted_iota(jnp.int32, (1, tile), 1) + base
        d2 = jnp.where(lane < hw_valid, d2, 0.0)

    # per-lane partial sum via a static, vreg-aligned slice tree (no XLU reduce)
    rows = tile // 128
    chunks = [d2[:, j * 128:(j + 1) * 128] for j in range(rows)]
    while len(chunks) > 1:
        nxt = [chunks[i] + chunks[i + 1] for i in range(0, len(chunks) - 1, 2)]
        if len(chunks) % 2:
            nxt.append(chunks[-1])
        chunks = nxt
    loss_ref[0] += chunks[0]                                          # (1, 128)


def backbone_hm_and_mse(image_nchw, gt_hm_nchw, params):
    B, C, H, W = image_nchw.shape
    HW = H * W
    Fh = params['w'].shape[1]

    vmem_cap = _vmem_capacity_bytes()
    tile = _pick_tile_hw(HW, C, Fh, vmem_cap)
    n_tiles = -(-HW // tile)
    split = 2 if n_tiles >= 2 else 1            # v7x megacore split over HW halves
    hw_pad = _round_up(HW, tile * split)
    T = hw_pad // (tile * split)
    need_mask = hw_pad != HW

    x = image_nchw.reshape(B, C, HW)            # free reshape (row-major NCHW)
    gt = gt_hm_nchw.reshape(B, 1, HW)
    if need_mask:
        # TODO(synk): padding costs one extra HBM pass; only triggers when HW has no
        # tile*split-aligned factorisation (e.g. 600x600).
        x = jnp.pad(x, ((0, 0), (0, 0), (0, hw_pad - HW)))
        gt = jnp.pad(gt, ((0, 0), (0, 0), (0, hw_pad - HW)))

    wt = params['w'].T                          # (F, C)  -- tiny
    bcol = params['b'].reshape(-1, 1)           # (F, 1)
    whr = params['wh'].reshape(1, -1)           # (1, F)  head weight (MXU LHS)
    bh = params['bh'].reshape(1, 1)             # (1, 1)

    const3 = lambda b, s, t: (0, 0)             # weights: same block every grid step
    hw_map = lambda b, s, t: (b, 0, s * T + t)  # HW tile index within this batch

    kern = functools.partial(_backbone_mse_kernel, tiles_per_split=T,
                             hw_valid=HW, need_mask=need_mask)

    hm, partials = pl.pallas_call(
        kern,
        out_shape=(jax.ShapeDtypeStruct((B, 1, hw_pad), jnp.float32),
                   jax.ShapeDtypeStruct((B * split, 1, 128), jnp.float32)),
        grid_spec=pltpu.PrefetchScalarGridSpec(
            num_scalar_prefetch=0,
            grid=(B, split, T),
            in_specs=[pl.BlockSpec((1, C, tile), hw_map),                # x
                      pl.BlockSpec((1, 1, tile), hw_map),                # gt hm
                      pl.BlockSpec((Fh, C), const3),                     # w^T
                      pl.BlockSpec((Fh, 1), const3),                     # bias
                      pl.BlockSpec((1, Fh), const3),                     # head w
                      pl.BlockSpec((1, 1), const3)],                     # head b
            out_specs=(pl.BlockSpec((1, 1, tile), hw_map),               # hm
                       pl.BlockSpec((1, 1, 128),
                                    lambda b, s, t: (b * split + s, 0, 0))),
        ),
        compiler_params=pltpu.CompilerParams(
            dimension_semantics=("parallel", "parallel", "arbitrary"),
            vmem_limit_bytes=int(min(vmem_cap * 3 // 4, 128 * 1024 * 1024))),
        # TODO(synk): with a bf16 input pipeline, stream image/hm in bf16 (keep MXU
        # accumulation + MSE accumulator in f32) for ~1.8x on HBM-bound v5e/v6e.
    )(x, gt, wt, bcol, whr, bh)
    return hm, partials, hw_pad


# ----------------------------------------------------------------------------
# Kernel 2 (fused AFE): pointwise backbone on gathered box-center pixels
#   + affinity matmul + softmax CE matching loss + accuracy + argmax
# Affinity matrix stays in registers (never written to HBM).
# ----------------------------------------------------------------------------
def _afe_kernel(pxp_ref, pxn_ref, lab_ref, w_ref, b_ref, stats_ref, pred_ref):
    w = w_ref[...]                                           # (C, F)
    b = b_ref[...]                                           # (1, F)

    B, Np, C = pxp_ref.shape
    Nn = pxn_ref.shape[1]

    fp = jnp.dot(pxp_ref[...].reshape(B * Np, C), w,
                 preferred_element_type=jnp.float32) + b
    fp = jnp.maximum(fp, 0.0).reshape(B, Np, -1)             # (B, Np, F)
    fn = jnp.dot(pxn_ref[...].reshape(B * Nn, C), w,
                 preferred_element_type=jnp.float32) + b
    fn = jnp.maximum(fn, 0.0).reshape(B, Nn, -1)             # (B, Nn, F)

    aff = jnp.einsum('bpf,bnf->bpn', fp, fn,
                     preferred_element_type=jnp.float32)     # (B, Np, Nn) in-register

    m = jnp.max(aff, axis=-1, keepdims=True)
    z = aff - m
    lse = jnp.log(jnp.sum(jnp.exp(z), axis=-1, keepdims=True))
    logp = z - lse                                           # log-softmax over n

    labels = lab_ref[...]                                    # (B, Np) int32
    iota_n = jax.lax.broadcasted_iota(jnp.int32, (B, Np, Nn), 2)
    one_hot = (iota_n == labels[:, :, None]).astype(jnp.float32)
    # TODO(synk): no ignore/-1 label handling (real AFE loss semantics are opaque).
    loss = -jnp.sum(one_hot * logp) / (B * Np)

    # manual argmax (smallest index attaining the row max)
    pred = jnp.min(jnp.where(aff >= m, iota_n, Nn), axis=-1).astype(jnp.int32)
    pred_ref[...] = pred
    acc = jnp.mean((pred == labels).astype(jnp.float32))

    # lane-dense stats vector: [0]=matching loss, [1]=accuracy
    lane = jax.lax.broadcasted_iota(jnp.int32, (1, 128), 1)
    stats_ref[...] = (jnp.where(lane == 0, loss, 0.0)
                      + jnp.where(lane == 1, acc, 0.0))


def afe_matching(px_pre, px_next, labels, params):
    B, Np, _ = px_pre.shape
    w = params['w']                        # (C, F)
    brow = params['b'].reshape(1, -1)      # (1, F)
    # TODO(synk): for realistic box counts, pad Np/Nn to multiples of 8, make the
    # pred output lane-dense, and fuse the center-pixel gather via scalar prefetch.
    return pl.pallas_call(
        _afe_kernel,
        out_shape=(jax.ShapeDtypeStruct((1, 128), jnp.float32),
                   jax.ShapeDtypeStruct((B, Np), jnp.int32)),
        in_specs=[pl.BlockSpec(memory_space=pltpu.MemorySpace.VMEM)] * 5,
        out_specs=(pl.BlockSpec(memory_space=pltpu.MemorySpace.VMEM),
                   pl.BlockSpec(memory_space=pltpu.MemorySpace.VMEM)),
    )(px_pre, px_next, labels, w, brow)


# ----------------------------------------------------------------------------
# Plain-JAX glue
# ----------------------------------------------------------------------------
def init_params(key, C, F=F_HIDDEN):
    k1, k2, k3, k4 = jax.random.split(key, 4)
    return {'w': jax.random.normal(k1, (C, F), jnp.float32) * 0.1,
            'b': jax.random.normal(k2, (F,), jnp.float32) * 0.01,
            'wh': jax.random.normal(k3, (F,), jnp.float32) * 0.1,
            'bh': jax.random.normal(k4, (1,), jnp.float32) * 0.01}


def gather_center_pixels(image_nchw, bboxes):
    """Gather the input pixel at each bbox center: (B, N, C).

    Valid stand-in for gathering from the feature maps because the synthetic
    backbone is a pointwise 1x1-conv (conv-then-gather == gather-then-conv)."""
    B, C, H, W = image_nchw.shape
    cx = jnp.clip(((bboxes[..., 0] + bboxes[..., 2]) * 0.5).astype(jnp.int32), 0, W - 1)
    cy = jnp.clip(((bboxes[..., 1] + bboxes[..., 3]) * 0.5).astype(jnp.int32), 0, H - 1)
    idx = cy * W + cx                                          # (B, N)
    flat = image_nchw.reshape(B, C, H * W)
    px = jnp.take_along_axis(flat, idx[:, None, :], axis=2)    # (B, C, N)
    return jnp.transpose(px, (0, 2, 1))                        # (B, N, C) -- tiny


def model_with_loss_forward(batch, params, opt):
    """Mirrors ModleWithLoss.forward (use_pixell=False branch)."""
    B, C, H, W = batch['image'].shape
    HW = H * W

    # outputs, FeatureMaps_next = self.model(batch['image'], ...)  (+ fused det. loss)
    hm_flat, mse_partials, hw_pad = backbone_hm_and_mse(
        batch['image'], batch['hm'], params)
    if hw_pad != HW:
        hm_flat = hm_flat[..., :HW]
    hm = hm_flat.reshape(B, 1, H, W)                           # free reshape, NCHW
    outputs = [{'hm': hm}]

    # _, loss_stats = self.loss(outputs, batch)   (heatmap MSE stand-in, fused above)
    loss_hm = jnp.sum(mse_partials) / (B * HW)                 # per-lane partials
    loss_stats = {'hm': loss_hm, 'tot': loss_hm}

    # self.model.img2feats(batch['pre_image']) + self.model.AFE(...):
    # gather box-center pixels from both frames; the AFE kernel applies the same
    # pointwise backbone to them and computes the affinity/matching loss.
    # TODO(synk): a real (non-pointwise) DLA backbone needs the full feature map.
    px_pre = gather_center_pixels(batch['pre_image'], batch['bboxes_pre'])
    px_next = gather_center_pixels(batch['image'], batch['bboxes_next'])

    # AFE.loss(x, labels, current_indexes, next_indexes)
    # TODO(synk): loss_pre / loss_next / loss_similarity and the current/next index
    # remapping of the real DAN-style AFE are not reproduced; only the matching CE
    # loss / accuracy / predicted indexes (used downstream) are.
    stats, predict_indexes = afe_matching(px_pre, px_next, batch['labels'], params)
    loss_matching = stats[0, 0]
    accuracy = stats[0, 1]

    loss_stats['matching'] = loss_matching
    loss_stats['tot'] = loss_stats['tot'] + 0.5 * opt['matching_weight'] * loss_matching
    loss_stats['matching_accuracy'] = accuracy
    loss_stats['predict_indexes'] = predict_indexes
    return outputs[-1], loss_stats['tot'], loss_stats


if __name__ == "__main__":
    key = jax.random.PRNGKey(0)
    B, C, H, W = 2, 4, 16, 16
    Np, Nn = 8, 8
    opt = {'matching_weight': 1.0, 'use_pixell': False}

    ks = jax.random.split(key, 8)
    image = jax.random.normal(ks[0], (B, C, H, W), jnp.float32)
    pre_image = jax.random.normal(ks[1], (B, C, H, W), jnp.float32)
    gt_hm = jax.random.uniform(ks[2], (B, 1, H, W), jnp.float32)
    xy1 = jax.random.uniform(ks[3], (B, Np, 2), jnp.float32, 0.0, W - 4)
    wh_box = jax.random.uniform(ks[4], (B, Np, 2), jnp.float32, 1.0, 4.0)
    bboxes_pre = jnp.concatenate([xy1, xy1 + wh_box], axis=-1)
    xy1n = jax.random.uniform(ks[5], (B, Nn, 2), jnp.float32, 0.0, W - 4)
    whn = jax.random.uniform(ks[6], (B, Nn, 2), jnp.float32, 1.0, 4.0)
    bboxes_next = jnp.concatenate([xy1n, xy1n + whn], axis=-1)
    labels = jax.random.randint(ks[7], (B, Np), 0, Nn, jnp.int32)

    batch = {
        'image': image, 'pre_image': pre_image, 'hm': gt_hm,
        'bboxes_pre': bboxes_pre, 'bboxes_next': bboxes_next,
        'labels': labels,
        'current_indexes': jnp.arange(Np, dtype=jnp.int32)[None].repeat(B, 0),
        'next_indexes': jnp.arange(Nn, dtype=jnp.int32)[None].repeat(B, 0),
    }

    params = init_params(jax.random.PRNGKey(42), C)

    out_last, tot, stats = model_with_loss_forward(batch, params, opt)
    jax.block_until_ready((out_last['hm'], tot, stats['matching'],
                           stats['hm'], stats['matching_accuracy'],
                           stats['predict_indexes']))
    print("KERNEL_OK")
</pallas_src>

<mosaic_0001>
module attributes {stable_mosaic.version = 11 : i64} {
  func.func @_backbone_mse_kernel(%arg0: i32, %arg1: i32, %arg2: i32, %arg3: memref<1x4x256xf32, #tpu.memory_space<vmem>>, %arg4: memref<1x1x256xf32, #tpu.memory_space<vmem>>, %arg5: memref<32x4xf32, #tpu.memory_space<vmem>>, %arg6: memref<32x1xf32, #tpu.memory_space<vmem>>, %arg7: memref<1x32xf32, #tpu.memory_space<vmem>>, %arg8: memref<1x1xf32, #tpu.memory_space<vmem>>, %arg9: memref<1x1x256xf32, #tpu.memory_space<vmem>>, %arg10: memref<1x1x128xf32, #tpu.memory_space<vmem>>) attributes {dimension_semantics = [#tpu.dimension_semantics<parallel>, #tpu.dimension_semantics<parallel>, #tpu.dimension_semantics<arbitrary>], iteration_bounds = array<i64: 2, 1, 1>, scalar_prefetch = 0 : i64, scratch_operands = 0 : i64, tpu.core_type = #tpu.core_type<tc>, window_params = [{transform_indices = @transform_0, window_bounds = array<i64: 1, 4, 256>}, {transform_indices = @transform_1, window_bounds = array<i64: 1, 1, 256>}, {pipeline_mode = #tpu.pipeline_mode<synchronous>, transform_indices = @transform_2, window_bounds = array<i64: 32, 4>}, {pipeline_mode = #tpu.pipeline_mode<synchronous>, transform_indices = @transform_3, window_bounds = array<i64: 32, 1>}, {pipeline_mode = #tpu.pipeline_mode<synchronous>, transform_indices = @transform_4, window_bounds = array<i64: 1, 32>}, {pipeline_mode = #tpu.pipeline_mode<synchronous>, transform_indices = @transform_5, window_bounds = array<i64: 1, 1>}, {transform_indices = @transform_6, window_bounds = array<i64: 1, 1, 256>}, {transform_indices = @transform_7, window_bounds = array<i64: 1, 1, 128>}]} {
    %c0_i32 = arith.constant 0 : i32
    %0 = arith.cmpi eq, %arg2, %c0_i32 : i32
    %1 = arith.extui %0 : i1 to i32
    %c0_i32_0 = arith.constant 0 : i32
    %2 = arith.cmpi ne, %1, %c0_i32_0 : i32
    scf.if %2 {
      %cst_26 = arith.constant 0.000000e+00 : f32
      %38 = vector.broadcast %cst_26 : f32 to vector<1x1x128xf32>
      %c0_27 = arith.constant 0 : index
      %c0_28 = arith.constant 0 : index
      %c0_29 = arith.constant 0 : index
      %39 = vector.load %arg10[%c0_27, %c0_28, %c0_29] : memref<1x1x128xf32, #tpu.memory_space<vmem>>, vector<1x1x128xf32>
      tpu.vector_store %arg10[%c0_27, %c0_28, %c0_29], %38 {strides = array<i32>} : memref<1x1x128xf32, #tpu.memory_space<vmem>>, vector<1x1x128xf32>,
    } else {
    }
    %c0 = arith.constant 0 : index
    %c0_1 = arith.constant 0 : index
    %c0_2 = arith.constant 0 : index
    %3 = vector.load %arg3[%c0, %c0_1, %c0_2] : memref<1x4x256xf32, #tpu.memory_space<vmem>>, vector<1x4x256xf32>
    %4 = vector.shape_cast %3 : vector<1x4x256xf32> to vector<4x256xf32>
    %c0_3 = arith.constant 0 : index
    %c0_4 = arith.constant 0 : index
    %5 = vector.load %arg5[%c0_3, %c0_4] : memref<32x4xf32, #tpu.memory_space<vmem>>, vector<32x4xf32>
    %cst = arith.constant dense<0.000000e+00> : vector<32x256xf32>
    %6 = tpu.matmul %5, %4, %cst {dimension_numbers = #tpu.dot_dimension_numbers<[1], [0], [0], [1], [0, 0, 1, 1], [], []>} : vector<32x4xf32>, vector<4x256xf32>, vector<32x256xf32> -> vector<32x256xf32>
    %c0_5 = arith.constant 0 : index
    %c0_6 = arith.constant 0 : index
    %7 = vector.load %arg6[%c0_5, %c0_6] : memref<32x1xf32, #tpu.memory_space<vmem>>, vector<32x1xf32>
    %8 = vector.broadcast %7 : vector<32x1xf32> to vector<32x256xf32>
    %9 = arith.addf %6, %8 : vector<32x256xf32>
    %cst_7 = arith.constant 0.000000e+00 : f32
    %10 = vector.broadcast %cst_7 : f32 to vector<32x256xf32>
    %11 = arith.maximumf %9, %10 : vector<32x256xf32>
    %c0_8 = arith.constant 0 : index
    %c0_9 = arith.constant 0 : index
    %12 = vector.load %arg7[%c0_8, %c0_9] : memref<1x32xf32, #tpu.memory_space<vmem>>, vector<1x32xf32>
    %cst_10 = arith.constant dense<0.000000e+00> : vector<1x256xf32>
    %13 = tpu.matmul %12, %11, %cst_10 {dimension_numbers = #tpu.dot_dimension_numbers<[1], [0], [0], [1], [0, 0, 1, 1], [], []>} : vector<1x32xf32>, vector<32x256xf32>, vector<1x256xf32> -> vector<1x256xf32>
    %c0_11 = arith.constant 0 : index
    %c0_12 = arith.constant 0 : index
    %14 = vector.load %arg8[%c0_11, %c0_12] : memref<1x1xf32, #tpu.memory_space<vmem>>, vector<1x1xf32>
    %15 = vector.broadcast %14 : vector<1x1xf32> to vector<1x256xf32>
    %16 = arith.addf %13, %15 : vector<1x256xf32>
    %17 = arith.negf %16 : vector<1x256xf32>
    %18 = math.exp %17 : vector<1x256xf32>
    %cst_13 = arith.constant 1.000000e+00 : f32
    %19 = vector.broadcast %cst_13 : f32 to vector<1x256xf32>
    %20 = arith.addf %19, %18 : vector<1x256xf32>
    %21 = arith.divf %19, %20 : vector<1x256xf32>
    %c0_14 = arith.constant 0 : index
    %c0_15 = arith.constant 0 : index
    %c0_16 = arith.constant 0 : index
    %22 = vector.load %arg9[%c0_14, %c0_15, %c0_16] : memref<1x1x256xf32, #tpu.memory_space<vmem>>, vector<1x1x256xf32>
    %23 = vector.shape_cast %22 : vector<1x1x256xf32> to vector<1x256xf32>
    %24 = vector.shape_cast %21 : vector<1x256xf32> to vector<1x1x256xf32>
    tpu.vector_store %arg9[%c0_14, %c0_15, %c0_16], %24 {strides = array<i32>} : memref<1x1x256xf32, #tpu.memory_space<vmem>>, vector<1x1x256xf32>,
    %c0_17 = arith.constant 0 : index
    %c0_18 = arith.constant 0 : index
    %c0_19 = arith.constant 0 : index
    %25 = vector.load %arg4[%c0_17, %c0_18, %c0_19] : memref<1x1x256xf32, #tpu.memory_space<vmem>>, vector<1x1x256xf32>
    %26 = vector.shape_cast %25 : vector<1x1x256xf32> to vector<1x256xf32>
    %27 = arith.subf %21, %26 : vector<1x256xf32>
    %28 = arith.mulf %27, %27 : vector<1x256xf32>
    %29 = vector.extract_strided_slice %28 {offsets = [0, 0], sizes = [1, 128], strides = [1, 1]} : vector<1x256xf32> to vector<1x128xf32>
    %30 = vector.extract_strided_slice %28 {offsets = [0, 128], sizes = [1, 128], strides = [1, 1]} : vector<1x256xf32> to vector<1x128xf32>
    %31 = arith.addf %29, %30 : vector<1x128xf32>
    %c0_20 = arith.constant 0 : index
    %c0_21 = arith.constant 0 : index
    %c0_22 = arith.constant 0 : index
    %32 = vector.load %arg10[%c0_20, %c0_21, %c0_22] : memref<1x1x128xf32, #tpu.memory_space<vmem>>, vector<1x1x128xf32>
    %33 = vector.shape_cast %32 : vector<1x1x128xf32> to vector<1x128xf32>
    %34 = arith.addf %33, %31 : vector<1x128xf32>
    %c0_23 = arith.constant 0 : index
    %c0_24 = arith.constant 0 : index
    %c0_25 = arith.constant 0 : index
    %35 = vector.load %arg10[%c0_23, %c0_24, %c0_25] : memref<1x1x128xf32, #tpu.memory_space<vmem>>, vector<1x1x128xf32>
    %36 = vector.shape_cast %35 : vector<1x1x128xf32> to vector<1x128xf32>
    %37 = vector.shape_cast %34 : vector<1x128xf32> to vector<1x1x128xf32>
    tpu.vector_store %arg10[%c0_23, %c0_24, %c0_25], %37 {strides = array<i32>} : memref<1x1x128xf32, #tpu.memory_space<vmem>>, vector<1x1x128xf32>,
    return
  }
  func.func @transform_0(%arg0: i32, %arg1: i32, %arg2: i32) -> (i32, i32, i32) {
    %c1_i32 = arith.constant 1 : i32
    %0 = arith.muli %arg1, %c1_i32 : i32
    %1 = arith.addi %0, %arg2 : i32
    %c0_i32 = arith.constant 0 : i32
    %c0_i32_0 = arith.constant 0 : i32
    return %arg0, %c0_i32, %1 : i32, i32, i32
  }
  func.func @transform_1(%arg0: i32, %arg1: i32, %arg2: i32) -> (i32, i32, i32) {
    %c1_i32 = arith.constant 1 : i32
    %0 = arith.muli %arg1, %c1_i32 : i32
    %1 = arith.addi %0, %arg2 : i32
    %c0_i32 = arith.constant 0 : i32
    %c0_i32_0 = arith.constant 0 : i32
    return %arg0, %c0_i32, %1 : i32, i32, i32
  }
  func.func @transform_2(%arg0: i32, %arg1: i32, %arg2: i32) -> (i32, i32) {
    %c0_i32 = arith.constant 0 : i32
    %c0_i32_0 = arith.constant 0 : i32
    %c0_i32_1 = arith.constant 0 : i32
    return %c0_i32, %c0_i32_0 : i32, i32
  }
  func.func @transform_3(%arg0: i32, %arg1: i32, %arg2: i32) -> (i32, i32) {
    %c0_i32 = arith.constant 0 : i32
    %c0_i32_0 = arith.constant 0 : i32
    %c0_i32_1 = arith.constant 0 : i32
    return %c0_i32, %c0_i32_0 : i32, i32
  }
  func.func @transform_4(%arg0: i32, %arg1: i32, %arg2: i32) -> (i32, i32) {
    %c0_i32 = arith.constant 0 : i32
    %c0_i32_0 = arith.constant 0 : i32
    %c0_i32_1 = arith.constant 0 : i32
    return %c0_i32, %c0_i32_0 : i32, i32
  }
  func.func @transform_5(%arg0: i32, %arg1: i32, %arg2: i32) -> (i32, i32) {
    %c0_i32 = arith.constant 0 : i32
    %c0_i32_0 = arith.constant 0 : i32
    %c0_i32_1 = arith.constant 0 : i32
    return %c0_i32, %c0_i32_0 : i32, i32
  }
  func.func @transform_6(%arg0: i32, %arg1: i32, %arg2: i32) -> (i32, i32, i32) {
    %c1_i32 = arith.constant 1 : i32
    %0 = arith.muli %arg1, %c1_i32 : i32
    %1 = arith.addi %0, %arg2 : i32
    %c0_i32 = arith.constant 0 : i32
    %c0_i32_0 = arith.constant 0 : i32
    return %arg0, %c0_i32, %1 : i32, i32, i32
  }
  func.func @transform_7(%arg0: i32, %arg1: i32, %arg2: i32) -> (i32, i32, i32) {
    %c1_i32 = arith.constant 1 : i32
    %0 = arith.muli %arg0, %c1_i32 : i32
    %1 = arith.addi %0, %arg1 : i32
    %c0_i32 = arith.constant 0 : i32
    %c0_i32_0 = arith.constant 0 : i32
    %c0_i32_1 = arith.constant 0 : i32
    return %1, %c0_i32, %c0_i32_0 : i32, i32, i32
  }
}

</mosaic_0001>

<bundles_post_ra>
// kernel: tpu_custom_call.1
= control target key start
LH: loop header
LB: loop body
LE: loop exit
PB: predicated region body
PF: predicated region fallthrough
CT: control target
= control target key end

     0   :  { %s1293_s0 = inlined_call_operand.vmem [shape: f32[2,4,256], index: 0, kind: input, shape index: {}]   ;;  %s1294_s1 = inlined_call_operand.vmem [shape: f32[2,1,256], index: 1, kind: input, shape index: {}]   ;;  %s1295_s2 = inlined_call_operand.vmem [shape: f32[32,4], index: 2, kind: input, shape index: {}]   ;;  %s1296_s3 = inlined_call_operand.vmem [shape: f32[32,1], index: 3, kind: input, shape index: {}]   ;;  %s1297_s4 = inlined_call_operand.vmem [shape: f32[1,32], index: 4, kind: input, shape index: {}]   ;;  %s1298_s5 = inlined_call_operand.<no memory space> [shape: f32[1,1], index: 5, kind: input, shape index: {}]   ;;  %s1299_s6 = inlined_call_operand.hbm [shape: f32[2,1,256], index: 6, kind: output, shape index: {0}]   ;;  %s1300_s7 = inlined_call_operand.hbm [shape: f32[2,1,128], index: 7, kind: output, shape index: {1}]  }
   0x1   :  { %v13_v0 = vstv %s1298_s5 }
   0x2   :  { %14 = vst [vmem:[#allocation2] sm:$0x1] %v13_v0 }
   0x3   :  { %15 = vsyncpa [#allocation4], 0 }
   0x4   :  { %17 = vsyncpa [#allocation4 + $0x1], 0 }
   0x5   :  { %18 = vsyncpa [#allocation6], 0 }
   0x6   :  { %20 = vsyncpa [#allocation6 + $0x1], 0  ;;  %s1100_s26 = smov 0   ;;  %s1102_s27 = smov 0  }
   0x7   :  { %s1104_s28 = smov 0   ;;  %s1106_s29 = smov 0  }
   0x8   :  { %s1108_s30 = smov 0   ;;  %s1110_s8 = smov 0  }
   0x9 LB: > { %s832_s5 = sadd.s32 4294967295, %s1050_s8   ;;  %s833_s9 = sadd.s32 4294967294, %s1050_s8   ;;  %s1050_s8 = sphi %s1110_s8, %s26_s8   ;;  %s1046_s30 = sphi %s1108_s30, %s1307_s30   ;;  %s1042_s29 = sphi %s1106_s29, %s1306_s29   ;;  %s1038_s28 = sphi %s1104_s28, %s1305_s28   ;;  %s1034_s27 = sphi %s1102_s27, %s1304_s27   ;;  %s1030_s26 = sphi %s1100_s26, %s1303_s26  }
   0xa   : > { %s45_s10 = sadd.s32 1, %s1046_s30  ;;  %s200_s11 = sadd.s32 1, %s1038_s28 }
   0xb   : > { %p47_p0 = scmp.ge.s32.totalorder %s45_s10, 2  ;;  %p210_p1 = scmp.ne.s32.totalorder %s1038_s28, %s1034_s27 }
   0xc   : > { %p211_p2 = scmp.eq.s32.totalorder %s832_s5, 1  ;;  %p216_p3 = scmp.ne.s32.totalorder %s1034_s27, %s1030_s26 }
   0xd   : > { %s1309_s10 = smov (%p47_p0, %s45_s10), 0  ;;  %p217_p5 = scmp.eq.s32.totalorder %s833_s9, 1 }
   0xe   : > { %p1140_p4 = por %p211_p2, %p210_p1  ;;  %s195_s13 = ssub.s32 %s1046_s30, %s1309_s10 }
   0xf   : > { %p836_p6 = scmp.ge.s32.totalorder %s1050_s8, 1  ;;  %p198_p7 = scmp.eq.s32.totalorder %s195_s13, 0 }
  0x10   : > { %p1147_p8 = por %p217_p5, %p216_p3  ;;  %p304_p9 = scmp.lt.s32.totalorder %s1050_s8, 3 }
  0x11   : > { %s1153_s15 = scalar_select %p198_p7, %s1038_s28, %s200_s11  }
  0x12   : > { %p305_p10 = pnand %p836_p6, %p304_p9 }
  0x13   : > { %p356_p11 = scmp.lt.s32.totalorder (!%p305_p10), %s1042_s29, 1  ;;  %v1052_v1 = vmov (!%p305_p10), 0.0   ;;  %v390_v2 = vld [vmem:[%s1296_s3] sm:$0xff] (!%p305_p10)  ;;  %v1053_v3 = vmov (!%p305_p10), 0   ;;  %v392_v4 = vld [vmem:[%s1296_s3 + $0x10] sm:$0xff] (!%p305_p10)  ;;  %v391_v5 = vld [vmem:[%s1296_s3 + $0x8] sm:$0xff] (!%p305_p10)  ;;  %v538_v47 = vlaneseq (!%p305_p10) }
  0x14   : > { %308 = sbr.rel (%p305_p10) target bundleno = 555 (0x22b), region = 44  ;;  %498 = vmatprep.mubr.f32.mxu0 (!%p305_p10), %v1052_v1  ;;  %610 = vmatprep.mubr.f32.mxu1 (!%p305_p10), %v1052_v1  ;;  %v393_v6 = vld [vmem:[%s1296_s3 + $0x18] sm:$0xff] (!%p305_p10)  ;;  %vm429_vm0 = vcmask (!%p305_p10), 1043456   ;;  %v386_v9 = vld [vmem:[%s1295_s2] sm:$0xff] (!%p305_p10)  ;;  %vm416_vm1 = vcmask (!%p305_p10), 31744   ;;  %v387_v11 = vld [vmem:[%s1295_s2 + $0x8] sm:$0xff] (!%p305_p10) }
  0x15   : > { %929 = vset.pattern.permute.xlu0 (!%p305_p10), %v1053_v3  ;;  %930 = vset.pattern.permute.xlu1 (!%p305_p10), %v1053_v3  ;;  %v532_v10 = vld [vmem:[#allocation2] sm:$0x1] (!%p305_p10)  ;;  %v388_v12 = vld [vmem:[%s1295_s2 + $0x10] sm:$0xff] (!%p305_p10)  ;;  %v389_v13 = vld [vmem:[%s1295_s2 + $0x18] sm:$0xff] (!%p305_p10)  ;;  %vm542_vm2 = vcmask (!%p305_p10), 261120   ;;  %s1196_s5 = sand.u32 (!%p305_p10), 1, %s1034_s27  }
  0x16   : > { %396 = vperm.xlu0 (!%p305_p10), %929, %v390_v2   ;;  %406 = vperm.xlu1 (!%p305_p10), %930, %v392_v4   ;;  %v531_v46 = vld [vmem:[%s1297_s4] sm:$0x1] (!%p305_p10)  ;;  %s1199_s9 = scalar_lea.vmem (!%p305_p10), [#allocation5], %s1196_s5  ;;  %v539_v48 = vshrl.u32 (!%p305_p10), %v538_v47, 7  ;;  %v1054_v62 = vmov (!%p305_p10), 1966171168  }
  0x17   : > { %384 = vst [vmem:[%s1199_s9] sm:$0x1] (!%p305_p10), %v1052_v1  ;;  %v633_v63 = vunpack.c.l.s4 (!%p305_p10), %v1054_v62  ;;  %s837_s19 = sshll.u32 (!%p305_p10), %s1196_s5, 1  ;;  %vm649_vm3 = vcmp.lt.s32.totalorder (!%p305_p10), %v538_v47, 256  ;;  %s853_s22 = sshll.u32 (!%p305_p10), %s1042_s29, 4 }
  0x18   : > { %v540_v49 = vsub.s32 (!%p305_p10), 0, %v539_v48  ;;  %v660_v0 = vsub.s32 (!%p305_p10), 1, %v539_v48  ;;  %s347_s20 = scalar_lea.vmem (!%p305_p10), [#allocation3], %s837_s19  ;;  %s708_s23 = sshll.u32 (!%p305_p10), %s1199_s9, 4  ;;  %s1224_s23 = int_to_ptr.vmem [resolvable:$true] %s708_s23 }
  0x19   : > { %v634_v2 = vunpack.c.0.s8 (!%p305_p10), %v633_v63 }
  0x1a   : > { %401 = vperm.xlu0 (!%p305_p10), %929, %v391_v5   ;;  %411 = vperm.xlu1 (!%p305_p10), %930, %v393_v6  }
  0x1b   : > { %s1162_s18 = scalar_select %p356_p11, %s1042_s29, 1  ;;  %v637_v6 = vsub.s32 %v634_v2, %v539_v48 }
  0x1d   : > { %s856_s21 = sshll.u32 %s1162_s18, 3 }
  0x1e   : > { %s363_s11 = scalar_lea.vmem %s1293_s0, %s856_s21  ;;  %535 = vperm.xlu0 %929, %v532_v10   ;;  %s694_s21 = sshll.u32 %s347_s20, 4  ;;  %s1217_s21 = int_to_ptr.vmem [resolvable:$true] %s694_s21 }
  0x1f   : > { %v385_v7 = vld [vmem:[%s363_s11] sm:$0xff]  ;;  %s840_s11 = sshll.u32 %s1162_s18, 1  ;;  %s857_s18 = sshll.u32 %s1042_s29, 5 }
  0x20   : > { %v415_v8 = vcombine.high %v385_v7, %v385_v7  ;;  %s374_s17 = scalar_lea.vmem %s1294_s1, %s840_s11  ;;  %s1215_s11 = scalar_lea.hbm %s1299_s6, %s857_s18 }
  0x21   : > { %s673_s29 = scalar_lea.sflag [#allocation4], %s1196_s5  ;;  %s940_s19 = scalar_lea.vmem %s1217_s21, 32 }
  0x22   : > { %841 = vmatprep.subr.msk.mxu0 %vm429_vm0, %v415_v8  ;;  %p941_p12 = scmp.ne.s32.totalorder %s1217_s21, %s940_s19  ;;  %s1055_s18 = smov [#allocation3]  }
  0x23   : > { %842 = vmatpush1.msk.msra.mxu0 %vm429_vm0, %v385_v7  ;;  %s944_s24 = sshll.u32 %s1055_s18, 4  ;;  %s945_s24 = int_to_ptr.vmem [resolvable:$false] %s944_s24 }
  0x24   : > { %843 = vmatmul.mubr.msk.f32.vlgmr.msra.gmra.mrb[0].mxu0 %vm416_vm1, %v386_v9  ;;  %p942_p13 = pnand %p941_p12, %p1140_p4  ;;  %s946_s25 = scalar_lea.vmem %s945_s24, 64 }
  0x25   : > { %504 = vmatprep.mubr.f32.mxu0 %v1052_v1  ;;  %p947_p1 = scmp.lt.s32.totalorder %s1217_s21, %s945_s24  ;;  %p948_p2 = scmp.lt.s32.totalorder %s946_s25, %s940_s19 }
  0x26   : > { %p943_p0 = pneg %p942_p13 }
  0x27   : > { %p949_p3 = por %p948_p2, %p947_p1 }
  0x28   : > { %844 = vmatmul.mubr.msk.f32.gmra.mrb[2].mxu0 %vm416_vm1, %v387_v11 }
  0x29   : > { %510 = vmatprep.mubr.f32.mxu0 %v1052_v1  ;;  %p950_p5 = pnand %p949_p3, %p943_p0 }
  0x2c   : > { %845 = vmatmul.mubr.msk.f32.gmra.mrb[4].mxu0 %vm416_vm1, %v388_v12 }
  0x2d   : > { %516 = vmatprep.mubr.f32.mxu0 %v1052_v1  ;;  %v652_v1 = vld [vmem:[%s374_s17] sm:$0x3]  ;;  %s1222_s17 = scalar_lea.hbm %s1300_s7, %s853_s22 }
  0x2e   : > { %v657_v3 = vrot.slane %v652_v1, %v540_v49  ;;  %v661_v4 = vrot.slane %v652_v1, %v660_v0 }
  0x30   : > { %846 = vmatmul.mubr.msk.f32.gmra.mrb[6].mxu0 %vm416_vm1, %v389_v13 }
  0x95   : > { %v397_v14 = vpop.permute.xlu0 %396  ;;  %v407_v23 = vpop.permute.xlu1 %406 }
  0x99   : > { %v402_v18 = vpop.permute.xlu0 %401  ;;  %v412_v34 = vpop.permute.xlu1 %411 }
  0x9d   : > { %v536_v50 = vpop.permute.xlu0 %535 }
  0x9e   : > { %v541_v51 = vrot.slane %v536_v50, %v540_v49 }
  0xf7   : > { %v500_v15 = vpop.f32.mrb[0].mxu0 }
  0xf8   : > { %v502_v16 = vpop.f32.mrb[1].mxu0  ;;  %v501_v17 = vadd.f32 %v500_v15, %v397_v14 }
  0xf9   : > { %v503_v19 = vadd.f32 %v502_v16, %v397_v14  ;;  %v669_v14 = vld [vmem:[%s1199_s9] sm:$0x1] }
  0xfa   : > { %v523_v25 = vmax.f32 %v501_v17, 0.0 }
  0xfb   : > { %v506_v20 = vpop.f32.mrb[2].mxu0  ;;  %v524_v27 = vmax.f32 %v503_v19, 0.0 }
  0xfc   : > { %v507_v21 = vadd.f32 %v506_v20, %v402_v18  ;;  %v508_v22 = vpop.f32.mrb[3].mxu0 }
  0xfd   : > { %v509_v24 = vadd.f32 %v508_v22, %v402_v18 }
  0xfe   : > { %v525_v26 = vmax.f32 %v507_v21, 0.0 }
  0xff   : > { %v526_v28 = vmax.f32 %v509_v24, 0.0  ;;  %v512_v29 = vpop.f32.mrb[4].mxu0 }
 0x100   : > { %v514_v30 = vpop.f32.mrb[5].mxu0  ;;  %v860_v31 = vpack.c.bf16 %v525_v26, %v523_v25  ;;  %v513_v33 = vadd.f32 %v512_v29, %v407_v23 }
 0x101   : > { %v858_v32 = vpack.c.bf16 %v526_v28, %v524_v27  ;;  %v515_v35 = vadd.f32 %v514_v30, %v407_v23 }
 0x102   : > { %v527_v40 = vmax.f32 %v513_v33, 0.0 }
 0x103   : > { %v518_v36 = vpop.f32.mrb[6].mxu0  ;;  %859 = vmatprep.subr.bf16.mxu1 %v858_v32  ;;  %v528_v42 = vmax.f32 %v515_v35, 0.0 }
 0x104   : > { %v519_v37 = vadd.f32 %v518_v36, %v412_v34  ;;  %v520_v38 = vpop.f32.mrb[7].mxu0  ;;  %861 = vmatpush1.bf16.msra.mxu1 %v860_v31 }
 0x105   : > { %v521_v39 = vadd.f32 %v520_v38, %v412_v34 }
 0x106   : > { %v529_v41 = vmax.f32 %v519_v37, 0.0 }
 0x107   : > { %v530_v43 = vmax.f32 %v521_v39, 0.0 }
 0x108   : > { %v864_v44 = vpack.c.bf16 %v529_v41, %v527_v40 }
 0x109   : > { %v862_v45 = vpack.c.bf16 %v530_v43, %v528_v42 }
 0x10b   : > { %863 = vmatprep.subr.bf16.mxu1 %v862_v45 }
 0x10c   : > { %865 = vmatpush1.bf16.msra.mxu1 %v864_v44 }
 0x10f   : > { %847 = vmatmul.mubr.msk.f32.vlgmr.msra.gmra.mrb[0].mxu1 %vm542_vm2, %v531_v46 }
 0x1e2   : > { %v612_v52 = vpop.f32.mrb[0].mxu1 }
 0x1e3   : > { %v613_v53 = vadd.f32 %v612_v52, %v541_v51  ;;  %v614_v54 = vpop.f32.mrb[1].mxu1 }
 0x1e4   : > { %v615_v55 = vadd.f32 %v614_v54, %v541_v51 }
 0x1e5   : > { %v848_v56 = vmul.f32 -1.442695, %v613_v53 }
 0x1e6   : > { %v849_v57 = vmul.f32 -1.442695, %v615_v55 }
 0x1e7   : > { %932 = vpow2.f32 %v848_v56 }
 0x1e8   : > { %934 = vpow2.f32 %v849_v57 }
 0x1f1   : > { %v933_v58 = vpop.eup %932 }
 0x1f2   : > { %v935_v59 = vpop.eup %934  ;;  %v623_v60 = vadd.f32 1.0, %v933_v58 }
 0x1f3   : > { %v624_v61 = vadd.f32 1.0, %v935_v59 }
 0x1f4   : > { %936 = vrcp.f32 %v623_v60 }
 0x1f5   : > { %938 = vrcp.f32 %v624_v61 }
 0x1fe   : > { %v937_v5 = vpop.eup %936 }
 0x1ff   : > { %v939_v7 = vpop.eup %938  ;;  %v664_v8 = vsub.f32 %v937_v5, %v657_v3 }
 0x200   : > { %v631_v9 = vcombine.low %v937_v5, %v939_v7  ;;  %v665_v10 = vsub.f32 %v939_v7, %v661_v4 }
 0x201   : > { %v666_v11 = vmul.f32 %v664_v8, %v664_v8 }
 0x202   : > { %v638_v12 = vrot.slane %v631_v9, %v637_v6  ;;  %v667_v13 = vmul.f32 %v665_v10, %v665_v10 }
 0x204   : > { %v645_v15 = vrot.slane %v638_v12, %v637_v6  ;;  %v668_v16 = vadd.f32 %v667_v13, %v666_v11 }
 0x206   : > { %651 = vst.msk [vmem:[%s347_s20] sm:$0x3] %vm649_vm3, %v645_v15  ;;  %v670_v17 = vadd.f32 %v669_v14, %v668_v16 }
 0x207   : > { %953 = shalt.err (!%p950_p5)
}
 0x208   : > { %s954_s20 = scalar_lea.hbm %s1215_s11, 32  ;;  %s958_s16 = scalar_lea.hbm %s1299_s6, 64 }
 0x209   : > { %p955_p6 = scmp.ne.s32.totalorder %s1215_s11, %s954_s20  ;;  %p959_p10 = scmp.lt.u32.totalorder %s1215_s11, %s1299_s6 }
 0x20a   : > { %p960_p11 = scmp.lt.u32.totalorder %s958_s16, %s954_s20  ;;  %p962_p13 = scmp.lt.u32.totalorder %s954_s20, %s1215_s11 }
 0x20b   : > { %p956_p7 = pnand %p955_p6, %p1140_p4 }
 0x20c   : > { %p961_p12 = por %p960_p11, %p959_p10 }
 0x20d   : > { %p957_p9 = pneg %p956_p7 }
 0x20e   : > { %p963_p0 = por %p962_p13, %p961_p12 }
 0x210   : > { %p964_p1 = pnand %p963_p0, %p957_p9 }
 0x212   : > { %967 = shalt.err (!%p964_p1)
}
 0x213   : > { %866 = dma.vmem_to_hbm [thread:$0]  (%p1140_p4), %s1217_s21, 32, %s1215_s11, %s673_s29   ;;  %671 = vst [vmem:[%s1199_s9] sm:$0x1] %v670_v17 }
 0x214   : > { %s678_s19 = scalar_lea.sflag [#allocation6], %s1196_s5  ;;  %s968_s25 = scalar_lea.vmem %s1224_s23, 16 }
 0x215   : > { %p969_p2 = scmp.ne.s32.totalorder %s1224_s23, %s968_s25  ;;  %s1056_s20 = smov [#allocation5]  }
 0x216   : > { %s972_s22 = sshll.u32 %s1056_s20, 4  ;;  %s973_s22 = int_to_ptr.vmem [resolvable:$false] %s972_s22 }
 0x217   : > { %p970_p3 = pnand %p969_p2, %p1140_p4  ;;  %s974_s13 = scalar_lea.vmem %s973_s22, 32 }
 0x218   : > { %p975_p6 = scmp.lt.s32.totalorder %s1224_s23, %s973_s22  ;;  %p976_p7 = scmp.lt.s32.totalorder %s974_s13, %s968_s25 }
 0x219   : > { %p971_p5 = pneg %p970_p3 }
 0x21a   : > { %p977_p9 = por %p976_p7, %p975_p6 }
 0x21c   : > { %p978_p10 = pnand %p977_p9, %p971_p5 }
 0x21e   : > { %981 = shalt.err (!%p978_p10)
}
 0x21f   : > { %s982_s5 = scalar_lea.hbm %s1222_s17, 16  ;;  %s986_s11 = scalar_lea.hbm %s1300_s7, 32 }
 0x220   : > { %p983_p11 = scmp.ne.s32.totalorder %s1222_s17, %s982_s5  ;;  %p987_p0 = scmp.lt.u32.totalorder %s1222_s17, %s1300_s7 }
 0x221   : > { %p988_p1 = scmp.lt.u32.totalorder %s986_s11, %s982_s5  ;;  %p990_p3 = scmp.lt.u32.totalorder %s982_s5, %s1222_s17 }
 0x222   : > { %p984_p12 = pnand %p983_p11, %p1140_p4 }
 0x223   : > { %p989_p2 = por %p988_p1, %p987_p0 }
 0x224   : > { %p985_p13 = pneg %p984_p12 }
 0x225   : > { %p991_p5 = por %p990_p3, %p989_p2 }
 0x227   : > { %p992_p6 = pnand %p991_p5, %p985_p13 }
 0x229   : > { %995 = shalt.err (!%p992_p6)
}
 0x22a   : > { %867 = dma.vmem_to_hbm [thread:$0]  (%p1140_p4), %s1224_s23, 16, %s1222_s17, %s678_s19  }
 0x22b PF: > { %p877_p7 = scmp.ge.s32.totalorder %s1050_s8, 2  ;;  %s720_s18 = sand.u32 1, %s1030_s26  }
 0x22c   : > { %s721_s24 = scalar_lea.sflag [#allocation4], %s720_s18 }
 0x22d   : > { %p871_p9 = pnand %p877_p7, %p1147_p8 }
 0x22f   : > { %1021 = dma.done.wait (!%p871_p9), %s721_s24, 32  }
 0x230   : > { %1023 = vsyncadd (!%p871_p9), %s721_s24, 4294967264  ;;  %s730_s25 = scalar_lea.sflag [#allocation6], %s720_s18 }
 0x231   : > { %1025 = dma.done.wait (!%p871_p9), %s730_s25, 16  }
 0x232   : > { %1027 = vsyncadd (!%p871_p9), %s730_s25, 4294967280  ;;  %s26_s8 = sadd.s32 1, %s1050_s8   ;;  %s1303_s26 = smov %s1034_s27 }
 0x233   : > { %p23_p10 = scmp.ge.s32.totalorder %s26_s8, 4   ;;  %s1304_s27 = smov %s1038_s28 }
 0x234   : > { %s1305_s28 = smov %s1153_s15  ;;  %s1306_s29 = smov %s1046_s30 }
 0x235   : > { %s1307_s30 = smov %s1309_s10  ;;  %25 = sbr.rel (!%p23_p10) target bundleno = 9 (0x9), region = 103 }
 0x23c   :  { %734 = vsyncpa [#allocation4], 1 }
 0x23d   :  { %736 = vsyncpa [#allocation4 + $0x1], 1 }
 0x23e   :  { %737 = vsyncpa [#allocation6], 1 }
 0x23f   :  { %739 = vsyncpa [#allocation6 + $0x1], 1 }

</bundles_post_ra>
